<compile_context>
chip_gen: v7x
topology: tpu7x:2x2x1
jax: 0.10.0
libtpu: 0.0.40
codegen_flags: <defaults>
</compile_context>

<pallas_src>
import jax
import jax.numpy as jnp
from jax import lax
from jax.experimental import pallas as pl
from jax.experimental.pallas import tpu as pltpu

LANES = 128
SUBLANES = 8
ROW_ALIGN = 16             # block rows multiple of 16 (safe for f32 and bf16 tiling)
MAX_BLOCK_ROWS = 4096      # 4096*128*4B = 2 MiB per input per pipeline buffer
VMEM_LIMIT_BYTES = 64 * 1024 * 1024

_ARBITRARY = getattr(pltpu, "ARBITRARY", "arbitrary")
_CORE_PARALLEL = getattr(pltpu, "CORE_PARALLEL", _ARBITRARY)


def _cdiv(a, b):
    return -(-a // b)


def _round_up(a, b):
    return _cdiv(a, b) * b


def _num_tensorcores():
    """2 TensorCores per chip only on v7x; v5e/v6e (and unknown) -> 1."""
    try:
        kind = jax.devices()[0].device_kind.lower().replace(" ", "")
    except Exception:
        return 1
    return 2 if ("v7" in kind or "tpu7" in kind) else 1


def _prep(a):
    a = a.reshape(-1)
    if not (a.dtype == jnp.float32 or a.dtype == jnp.bfloat16):
        a = a.astype(jnp.float32)
    return a


def _make_kernel(num_cores, blocks_per_core, block_rows, n_rows, total_blocks):
    """Accumulate per-lane partials of (x*t, x+t, t*log x + (1-t)*log(1-x))."""
    last_block = total_blocks - 1
    rows_in_last = n_rows - last_block * block_rows
    need_row_mask = rows_in_last != block_rows          # static Python bool
    need_skip = num_cores * blocks_per_core > total_blocks  # static Python bool

    def accumulate(o_ref, x, t):
        # PyTorch binary_cross_entropy clamps the logs at -100 *before* the
        # multiply by t — this is also what makes zero pad/mask contribute 0.
        log_x = jnp.maximum(jnp.log(x), -100.0)
        log_1mx = jnp.maximum(jnp.log(1.0 - x), -100.0)
        bce_pos = log_1mx + t * (log_x - log_1mx)       # negated in the wrapper

        def fold(v):  # (block_rows,128) -> (8,128) per-lane partials (VPU adds)
            return jnp.sum(v.reshape(block_rows // SUBLANES, SUBLANES, LANES), axis=0)

        o_ref[0, 0] += fold(x * t)
        o_ref[0, 1] += fold(x + t)
        o_ref[0, 2] += fold(bce_pos)

    def kernel(x_ref, t_ref, o_ref):
        if num_cores > 1:
            step = pl.program_id(1)
            gb = pl.program_id(0) * blocks_per_core + step
        else:
            step = pl.program_id(0)
            gb = step

        @pl.when(step == 0)
        def _():
            o_ref[...] = jnp.zeros_like(o_ref)

        if not (need_row_mask or need_skip):
            accumulate(o_ref,
                       x_ref[...].astype(jnp.float32),
                       t_ref[...].astype(jnp.float32))
        else:
            @pl.when(gb < last_block)
            def _():
                accumulate(o_ref,
                           x_ref[...].astype(jnp.float32),
                           t_ref[...].astype(jnp.float32))

            @pl.when(gb == last_block)
            def _():
                x = x_ref[...].astype(jnp.float32)
                t = t_ref[...].astype(jnp.float32)
                if need_row_mask:
                    row = lax.broadcasted_iota(jnp.int32, (block_rows, LANES), 0)
                    valid = row < rows_in_last
                    x = jnp.where(valid, x, 0.0)
                    t = jnp.where(valid, t, 0.0)
                accumulate(o_ref, x, t)
            # gb > last_block (only possible when the core split over-covers):
            # contributes nothing; only the zero-init above runs for that step.

    return kernel


def dice_bce_loss(inputs, targets, weight=0.5, smooth=1.0):
    """Pallas implementation of DiceBCELoss.forward(inputs, targets, smooth)."""
    x = _prep(inputs)
    t = _prep(targets)
    n = x.shape[0]

    # Lane-dense (rows, 128) view.  Free reshape when N % 128 == 0; otherwise
    # pad only to the next multiple of 128 (the padded zeros contribute 0).
    # TODO(synk): a 1-D BlockSpec would avoid even this copy for ragged N.
    if n % LANES:
        pad = _round_up(n, LANES) - n
        x = jnp.pad(x, (0, pad))
        t = jnp.pad(t, (0, pad))
    n_rows = x.shape[0] // LANES

    num_cores = _num_tensorcores()
    block_rows = min(MAX_BLOCK_ROWS, _round_up(n_rows, ROW_ALIGN))
    total_blocks = _cdiv(n_rows, block_rows)

    x2 = x.reshape(n_rows, LANES)
    t2 = t.reshape(n_rows, LANES)

    if num_cores > 1:
        blocks_per_core = _cdiv(total_blocks, num_cores)
        grid = (num_cores, blocks_per_core)
        semantics = (_CORE_PARALLEL, _ARBITRARY)
        last_block = total_blocks - 1
        if num_cores * blocks_per_core > total_blocks:
            # Clamp so no DMA ever targets a fully out-of-bounds block; the
            # kernel skips accumulation for those steps anyway.
            def in_map(c, s):
                return (jnp.minimum(c * blocks_per_core + s, last_block), 0)
        else:
            def in_map(c, s):
                return (c * blocks_per_core + s, 0)
        out_map = lambda c, s: (c, 0, 0, 0)
    else:
        blocks_per_core = total_blocks
        grid = (total_blocks,)
        semantics = (_ARBITRARY,)
        in_map = lambda s: (s, 0)
        out_map = lambda s: (0, 0, 0, 0)

    kernel = _make_kernel(num_cores, blocks_per_core, block_rows, n_rows,
                          total_blocks)

    out_bytes = num_cores * 3 * SUBLANES * LANES * 4
    cost = pl.CostEstimate(
        flops=int(10 * n),
        transcendentals=int(2 * n),
        bytes_accessed=int(x2.nbytes + t2.nbytes + out_bytes),
    )

    partials = pl.pallas_call(
        kernel,
        out_shape=jax.ShapeDtypeStruct((num_cores, 3, SUBLANES, LANES), jnp.float32),
        grid_spec=pltpu.PrefetchScalarGridSpec(
            num_scalar_prefetch=0,
            grid=grid,
            in_specs=[
                pl.BlockSpec((block_rows, LANES), in_map),
                pl.BlockSpec((block_rows, LANES), in_map),
            ],
            out_specs=pl.BlockSpec((1, 3, SUBLANES, LANES), out_map),
        ),
        compiler_params=pltpu.CompilerParams(
            dimension_semantics=semantics,
            vmem_limit_bytes=VMEM_LIMIT_BYTES,
        ),
        cost_estimate=cost,
    )(x2, t2)

    # Tiny cross-lane reduction + scalar loss math in plain JAX.
    sums = jnp.sum(partials, axis=(0, 2, 3))  # [sum(x*t), sum(x)+sum(t), sum(bce_pos)]
    intersection = sums[0]
    sum_x_plus_t = sums[1]
    bce_sum = -sums[2]

    dice_loss = 1.0 - (2.0 * intersection + smooth) / (sum_x_plus_t + smooth)
    bce_mean = bce_sum / jnp.float32(n)
    return weight * bce_mean + (1.0 - weight) * dice_loss


def _reference(inputs, targets, weight=0.5, smooth=1.0):
    x = inputs.reshape(-1).astype(jnp.float32)
    t = targets.reshape(-1).astype(jnp.float32)
    inter = jnp.sum(x * t)
    dice = 1.0 - (2.0 * inter + smooth) / (jnp.sum(x) + jnp.sum(t) + smooth)
    log_x = jnp.maximum(jnp.log(x), -100.0)
    log_1mx = jnp.maximum(jnp.log(1.0 - x), -100.0)
    bce = jnp.mean(-(t * log_x + (1.0 - t) * log_1mx))
    return weight * bce + (1.0 - weight) * dice


if __name__ == "__main__":
    key = jax.random.PRNGKey(0)
    k1, k2 = jax.random.split(key)

    # Typical segmentation setup: predictions are sigmoid probabilities,
    # targets are binary masks. Shape (B, C, H, W) = (2, 4, 16, 16).
    logits = jax.random.normal(k1, (2, 4, 16, 16), dtype=jnp.float32)
    inputs = jax.nn.sigmoid(logits)
    targets = (jax.random.uniform(k2, (2, 4, 16, 16)) > 0.5).astype(jnp.float32)

    loss = dice_bce_loss(inputs, targets, weight=0.5, smooth=1.0)
    loss = jax.block_until_ready(loss)

    ref = _reference(inputs, targets, weight=0.5, smooth=1.0)
    assert jnp.allclose(loss, ref, rtol=1e-5, atol=1e-5), (loss, ref)

    print("KERNEL_OK")
</pallas_src>

<mosaic_0001>
module attributes {stable_mosaic.version = 11 : i64} {
  func.func @kernel(%arg0: i32, %arg1: memref<16x128xf32, #tpu.memory_space<vmem>>, %arg2: memref<16x128xf32, #tpu.memory_space<vmem>>, %arg3: memref<1x3x8x128xf32, #tpu.memory_space<vmem>>) attributes {dimension_semantics = [#tpu.dimension_semantics<arbitrary>], iteration_bounds = array<i64: 1>, scalar_prefetch = 0 : i64, scratch_operands = 0 : i64, tpu.core_type = #tpu.core_type<tc>, window_params = [{transform_indices = @transform_0, window_bounds = array<i64: 16, 128>}, {transform_indices = @transform_1, window_bounds = array<i64: 16, 128>}, {pipeline_mode = #tpu.pipeline_mode<synchronous>, transform_indices = @transform_2, window_bounds = array<i64: 1, 3, 8, 128>}]} {
    %c0_i32 = arith.constant 0 : i32
    %0 = arith.cmpi eq, %arg0, %c0_i32 : i32
    %1 = arith.extui %0 : i1 to i32
    %c0_i32_0 = arith.constant 0 : i32
    %2 = arith.cmpi ne, %1, %c0_i32_0 : i32
    scf.if %2 {
      %cst_31 = arith.constant 0.000000e+00 : f32
      %42 = vector.broadcast %cst_31 : f32 to vector<1x3x8x128xf32>
      %c0_32 = arith.constant 0 : index
      %c0_33 = arith.constant 0 : index
      %c0_34 = arith.constant 0 : index
      %c0_35 = arith.constant 0 : index
      %43 = vector.load %arg3[%c0_32, %c0_33, %c0_34, %c0_35] : memref<1x3x8x128xf32, #tpu.memory_space<vmem>>, vector<1x3x8x128xf32>
      tpu.vector_store %arg3[%c0_32, %c0_33, %c0_34, %c0_35], %42 {strides = array<i32>} : memref<1x3x8x128xf32, #tpu.memory_space<vmem>>, vector<1x3x8x128xf32>,
    } else {
    }
    %c0 = arith.constant 0 : index
    %c0_1 = arith.constant 0 : index
    %3 = vector.load %arg1[%c0, %c0_1] : memref<16x128xf32, #tpu.memory_space<vmem>>, vector<16x128xf32>
    %c0_2 = arith.constant 0 : index
    %c0_3 = arith.constant 0 : index
    %4 = vector.load %arg2[%c0_2, %c0_3] : memref<16x128xf32, #tpu.memory_space<vmem>>, vector<16x128xf32>
    %5 = math.log %3 : vector<16x128xf32>
    %cst = arith.constant -1.000000e+02 : f32
    %6 = vector.broadcast %cst : f32 to vector<16x128xf32>
    %7 = arith.maximumf %5, %6 : vector<16x128xf32>
    %cst_4 = arith.constant 1.000000e+00 : f32
    %8 = vector.broadcast %cst_4 : f32 to vector<16x128xf32>
    %9 = arith.subf %8, %3 : vector<16x128xf32>
    %10 = math.log %9 : vector<16x128xf32>
    %cst_5 = arith.constant -1.000000e+02 : f32
    %11 = vector.broadcast %cst_5 : f32 to vector<16x128xf32>
    %12 = arith.maximumf %10, %11 : vector<16x128xf32>
    %13 = arith.subf %7, %12 : vector<16x128xf32>
    %14 = arith.mulf %4, %13 : vector<16x128xf32>
    %15 = arith.addf %12, %14 : vector<16x128xf32>
    %c0_6 = arith.constant 0 : index
    %c0_7 = arith.constant 0 : index
    %c0_8 = arith.constant 0 : index
    %c0_9 = arith.constant 0 : index
    %16 = vector.load %arg3[%c0_6, %c0_7, %c0_8, %c0_9] : memref<1x3x8x128xf32, #tpu.memory_space<vmem>>, vector<1x1x8x128xf32>
    %17 = vector.shape_cast %16 : vector<1x1x8x128xf32> to vector<8x128xf32>
    %18 = arith.mulf %3, %4 : vector<16x128xf32>
    %19 = vector.shape_cast %18 : vector<16x128xf32> to vector<2x8x128xf32>
    %cst_10 = arith.constant dense<0.000000e+00> : vector<8x128xf32>
    %20 = vector.multi_reduction <add>, %19, %cst_10 [0] : vector<2x8x128xf32> to vector<8x128xf32>
    %21 = arith.addf %17, %20 : vector<8x128xf32>
    %c0_11 = arith.constant 0 : index
    %c0_12 = arith.constant 0 : index
    %c0_13 = arith.constant 0 : index
    %c0_14 = arith.constant 0 : index
    %22 = vector.load %arg3[%c0_11, %c0_12, %c0_13, %c0_14] : memref<1x3x8x128xf32, #tpu.memory_space<vmem>>, vector<1x1x8x128xf32>
    %23 = vector.shape_cast %22 : vector<1x1x8x128xf32> to vector<8x128xf32>
    %24 = vector.shape_cast %21 : vector<8x128xf32> to vector<1x1x8x128xf32>
    tpu.vector_store %arg3[%c0_11, %c0_12, %c0_13, %c0_14], %24 {strides = array<i32>} : memref<1x3x8x128xf32, #tpu.memory_space<vmem>>, vector<1x1x8x128xf32>,
    %c0_15 = arith.constant 0 : index
    %c1 = arith.constant 1 : index
    %c0_16 = arith.constant 0 : index
    %c0_17 = arith.constant 0 : index
    %25 = vector.load %arg3[%c0_15, %c1, %c0_16, %c0_17] : memref<1x3x8x128xf32, #tpu.memory_space<vmem>>, vector<1x1x8x128xf32>
    %26 = vector.shape_cast %25 : vector<1x1x8x128xf32> to vector<8x128xf32>
    %27 = arith.addf %3, %4 : vector<16x128xf32>
    %28 = vector.shape_cast %27 : vector<16x128xf32> to vector<2x8x128xf32>
    %cst_18 = arith.constant dense<0.000000e+00> : vector<8x128xf32>
    %29 = vector.multi_reduction <add>, %28, %cst_18 [0] : vector<2x8x128xf32> to vector<8x128xf32>
    %30 = arith.addf %26, %29 : vector<8x128xf32>
    %c0_19 = arith.constant 0 : index
    %c1_20 = arith.constant 1 : index
    %c0_21 = arith.constant 0 : index
    %c0_22 = arith.constant 0 : index
    %31 = vector.load %arg3[%c0_19, %c1_20, %c0_21, %c0_22] : memref<1x3x8x128xf32, #tpu.memory_space<vmem>>, vector<1x1x8x128xf32>
    %32 = vector.shape_cast %31 : vector<1x1x8x128xf32> to vector<8x128xf32>
    %33 = vector.shape_cast %30 : vector<8x128xf32> to vector<1x1x8x128xf32>
    tpu.vector_store %arg3[%c0_19, %c1_20, %c0_21, %c0_22], %33 {strides = array<i32>} : memref<1x3x8x128xf32, #tpu.memory_space<vmem>>, vector<1x1x8x128xf32>,
    %c0_23 = arith.constant 0 : index
    %c2 = arith.constant 2 : index
    %c0_24 = arith.constant 0 : index
    %c0_25 = arith.constant 0 : index
    %34 = vector.load %arg3[%c0_23, %c2, %c0_24, %c0_25] : memref<1x3x8x128xf32, #tpu.memory_space<vmem>>, vector<1x1x8x128xf32>
    %35 = vector.shape_cast %34 : vector<1x1x8x128xf32> to vector<8x128xf32>
    %36 = vector.shape_cast %15 : vector<16x128xf32> to vector<2x8x128xf32>
    %cst_26 = arith.constant dense<0.000000e+00> : vector<8x128xf32>
    %37 = vector.multi_reduction <add>, %36, %cst_26 [0] : vector<2x8x128xf32> to vector<8x128xf32>
    %38 = arith.addf %35, %37 : vector<8x128xf32>
    %c0_27 = arith.constant 0 : index
    %c2_28 = arith.constant 2 : index
    %c0_29 = arith.constant 0 : index
    %c0_30 = arith.constant 0 : index
    %39 = vector.load %arg3[%c0_27, %c2_28, %c0_29, %c0_30] : memref<1x3x8x128xf32, #tpu.memory_space<vmem>>, vector<1x1x8x128xf32>
    %40 = vector.shape_cast %39 : vector<1x1x8x128xf32> to vector<8x128xf32>
    %41 = vector.shape_cast %38 : vector<8x128xf32> to vector<1x1x8x128xf32>
    tpu.vector_store %arg3[%c0_27, %c2_28, %c0_29, %c0_30], %41 {strides = array<i32>} : memref<1x3x8x128xf32, #tpu.memory_space<vmem>>, vector<1x1x8x128xf32>,
    return
  }
  func.func @transform_0(%arg0: i32) -> (i32, i32) {
    %c0_i32 = arith.constant 0 : i32
    %c0_i32_0 = arith.constant 0 : i32
    return %arg0, %c0_i32 : i32, i32
  }
  func.func @transform_1(%arg0: i32) -> (i32, i32) {
    %c0_i32 = arith.constant 0 : i32
    %c0_i32_0 = arith.constant 0 : i32
    return %arg0, %c0_i32 : i32, i32
  }
  func.func @transform_2(%arg0: i32) -> (i32, i32, i32, i32) {
    %c0_i32 = arith.constant 0 : i32
    %c0_i32_0 = arith.constant 0 : i32
    %c0_i32_1 = arith.constant 0 : i32
    %c0_i32_2 = arith.constant 0 : i32
    %c0_i32_3 = arith.constant 0 : i32
    return %c0_i32, %c0_i32_0, %c0_i32_1, %c0_i32_2 : i32, i32, i32, i32
  }
}

</mosaic_0001>

<bundles_post_ra>
// kernel: tpu_custom_call.1
= control target key start
LH: loop header
LB: loop body
LE: loop exit
PB: predicated region body
PF: predicated region fallthrough
CT: control target
= control target key end

     0   :  { %7 = vsyncpa [#allocation3], 0  ;;  %s258_s0 = inlined_call_operand.hbm [shape: f32[16,128], index: 0, kind: input, shape index: {}]   ;;  %s259_s1 = inlined_call_operand.hbm [shape: f32[16,128], index: 1, kind: input, shape index: {}]   ;;  %s260_s2 = inlined_call_operand.hbm [shape: f32[1,3,8,128], index: 2, kind: output, shape index: {}]  }
   0x1   :  { %8 = vsyncpa [#allocation6], 0 }
   0x2   :  { %9 = vsyncpa [#allocation4], 0  ;;  %s193_s9 = smov [#allocation2]   ;;  %s121_s13 = scalar_lea.hbm %s258_s0, 256 }
   0x3   :  { %s15_s10 = sshll.u32 %s193_s9, 4  ;;  %p122_p0 = scmp.ne.s32.totalorder %s258_s0, %s121_s13  ;;  %s16_s10 = int_to_ptr.vmem [resolvable:$true] %s15_s10 }
   0x4   :  { %p125_p1 = scmp.lt.u32.totalorder %s121_s13, %s258_s0 }
   0x6   :  { %p127_p2 = pnand %p125_p1, %p122_p0 }
   0x8   :  { %130 = shalt.err (!%p127_p2)
}
   0x9   :  { %s131_s18 = scalar_lea.vmem %s16_s10, 256  ;;  %p136_p4 = scmp.lt.s32.totalorder %s16_s10, %s16_s10 }
   0xa   :  { %p132_p3 = scmp.ne.s32.totalorder %s16_s10, %s131_s18  ;;  %p137_p5 = scmp.lt.s32.totalorder %s131_s18, %s131_s18 }
   0xc   :  { %p138_p6 = por %p137_p5, %p136_p4 }
   0xe   :  { %p139_p7 = pnand %p138_p6, %p132_p3 }
  0x10   :  { %142 = shalt.err (!%p139_p7)
}
  0x11   :  { %s194_s19 = smov 128   ;;  %s195_s20 = smov 8  }
  0x12   :  { %21 = dma.hbm_to_vmem [thread:$0]  %s258_s0, 256, %s16_s10, [#allocation3], %s194_s19, %s194_s19, %s195_s20  }
  0x13   :  { %s196_s23 = smov [#allocation5]   ;;  %s143_s27 = scalar_lea.hbm %s259_s1, 256 }
  0x14   :  { %s27_s24 = sshll.u32 %s196_s23, 4  ;;  %p144_p8 = scmp.ne.s32.totalorder %s259_s1, %s143_s27  ;;  %s28_s24 = int_to_ptr.vmem [resolvable:$true] %s27_s24 }
  0x15   :  { %p147_p9 = scmp.lt.u32.totalorder %s143_s27, %s259_s1 }
  0x17   :  { %p149_p10 = pnand %p147_p9, %p144_p8 }
  0x19   :  { %152 = shalt.err (!%p149_p10)
}
  0x1a   :  { %s153_s4 = scalar_lea.vmem %s28_s24, 256  ;;  %p158_p12 = scmp.lt.s32.totalorder %s28_s24, %s28_s24 }
  0x1b   :  { %p154_p11 = scmp.ne.s32.totalorder %s28_s24, %s153_s4  ;;  %p159_p13 = scmp.lt.s32.totalorder %s153_s4, %s153_s4 }
  0x1d   :  { %p160_p0 = por %p159_p13, %p158_p12 }
  0x1f   :  { %p161_p1 = pnand %p160_p0, %p154_p11 }
  0x21   :  { %164 = shalt.err (!%p161_p1)
}
  0x22   :  { %33 = dma.hbm_to_vmem [thread:$0]  %s259_s1, 256, %s28_s24, [#allocation6], %s194_s19, %s194_s19, %s195_s20  }
  0x23   :  { %187 = dma.done.wait [#allocation3], 256  }
  0x24   :  { %188 = vsyncadd [#allocation3], 4294967040 }
  0x25   :  { %189 = dma.done.wait [#allocation6], 256  }
  0x26   :  { %190 = vsyncadd [#allocation6], 4294967040  ;;  %v47_v0 = vld [vmem:[#allocation2] sm:$0xff]  ;;  %v48_v1 = vld [vmem:[#allocation2 + $0x8] sm:$0xff]  ;;  %s197_s1 = smov [#allocation7]  }
  0x27   :  { %v49_v2 = vld [vmem:[#allocation5] sm:$0xff]  ;;  %v50_v3 = vld [vmem:[#allocation5 + $0x8] sm:$0xff]  ;;  %113 = vlog2.f32 %v47_v0  ;;  %v57_v6 = vsub.f32 1.0, %v47_v0  ;;  %v58_v9 = vsub.f32 1.0, %v48_v1  ;;  %s94_s6 = sshll.u32 %s197_s1, 4  ;;  %s95_s6 = int_to_ptr.vmem [resolvable:$true] %s94_s6 }
  0x28   :  { %v72_v4 = vmul.f32 %v49_v2, %v47_v0  ;;  %v79_v5 = vadd.f32 %v49_v2, %v47_v0  ;;  %115 = vlog2.f32 %v48_v1  ;;  %v73_v7 = vmul.f32 %v50_v3, %v48_v1  ;;  %s165_s7 = scalar_lea.vmem %s95_s6, 384  ;;  %p170_p3 = scmp.lt.s32.totalorder %s95_s6, %s95_s6 }
  0x29   :  { %v80_v8 = vadd.f32 %v50_v3, %v48_v1  ;;  %117 = vlog2.f32 %v57_v6  ;;  %p166_p2 = scmp.ne.s32.totalorder %s95_s6, %s165_s7  ;;  %p171_p4 = scmp.lt.s32.totalorder %s165_s7, %s165_s7 }
  0x2a   :  { %v74_v10 = vadd.f32 %v73_v7, %v72_v4  ;;  %119 = vlog2.f32 %v58_v9 }
  0x2b   :  { %v81_v11 = vadd.f32 %v80_v8, %v79_v5  ;;  %p172_p5 = por %p171_p4, %p170_p3 }
  0x2c   :  { %76 = vst [vmem:[#allocation7] sm:$0xff] %v74_v10 }
  0x2d   :  { %83 = vst [vmem:[#allocation7 + $0x8] sm:$0xff] %v81_v11  ;;  %p173_p6 = pnand %p172_p5, %p166_p2 }
  0x31   :  { %v114_v12 = vpop.eup %113 }
  0x32   :  { %v116_v13 = vpop.eup %115  ;;  %v52_v14 = vmul.f32 0.6931472, %v114_v12 }
  0x33   :  { %v118_v15 = vpop.eup %117  ;;  %v54_v16 = vmul.f32 0.6931472, %v116_v13 }
  0x34   :  { %v120_v17 = vpop.eup %119  ;;  %v55_v18 = vmax.f32 %v52_v14, -100.0  ;;  %v60_v19 = vmul.f32 0.6931472, %v118_v15 }
  0x35   :  { %v56_v20 = vmax.f32 %v54_v16, -100.0  ;;  %v62_v21 = vmul.f32 0.6931472, %v120_v17 }
  0x36   :  { %v63_v22 = vmax.f32 %v60_v19, -100.0 }
  0x37   :  { %v64_v23 = vmax.f32 %v62_v21, -100.0 }
  0x38   :  { %v65_v24 = vsub.f32 %v55_v18, %v63_v22 }
  0x39   :  { %v66_v25 = vsub.f32 %v56_v20, %v64_v23 }
  0x3a   :  { %v67_v26 = vmul.f32 %v65_v24, %v49_v2 }
  0x3b   :  { %v68_v27 = vmul.f32 %v66_v25, %v50_v3 }
  0x3c   :  { %v69_v28 = vadd.f32 %v67_v26, %v63_v22 }
  0x3d   :  { %v70_v29 = vadd.f32 %v68_v27, %v64_v23 }
  0x3f   :  { %v86_v30 = vadd.f32 %v70_v29, %v69_v28 }
  0x41   :  { %88 = vst [vmem:[#allocation7 + $0x10] sm:$0xff] %v86_v30 }
  0x42   :  { %176 = shalt.err (!%p173_p6)
}
  0x43   :  { %s177_s10 = scalar_lea.hbm %s260_s2, 384 }
  0x44   :  { %p178_p7 = scmp.ne.s32.totalorder %s260_s2, %s177_s10  ;;  %p181_p8 = scmp.lt.u32.totalorder %s177_s10, %s260_s2 }
  0x46   :  { %p183_p9 = pnand %p181_p8, %p178_p7 }
  0x48   :  { %186 = shalt.err (!%p183_p9)
}
  0x49   :  { %100 = dma.vmem_to_hbm [thread:$0]  %s95_s6, 384, %s260_s2, [#allocation4], %s194_s19, %s194_s19, %s195_s20  }
  0x4a   :  { %191 = dma.done.wait [#allocation4], 384  }
  0x4b   :  { %192 = vsyncadd [#allocation4], 4294966912 }
  0x4c   :  { %104 = vsyncpa [#allocation3], 1 }
  0x4d   :  { %105 = vsyncpa [#allocation6], 1 }
  0x4e   :  { %106 = vsyncpa [#allocation4], 1 }

</bundles_post_ra>
